<compile_context>
chip_gen: v7x
topology: tpu7x:2x2x1
jax: 0.10.0
libtpu: 0.0.40
codegen_flags: <defaults>
</compile_context>

<pallas_src>
import functools

import jax
import jax.numpy as jnp
from jax.experimental import pallas as pl
from jax.experimental.pallas import tpu as pltpu


def _round_up(v, m):
    return (v + m - 1) // m * m


def _pick_batch_tile(b_padded, cap):
    """Largest multiple-of-16 divisor of b_padded that is <= cap, preferring a
    tile that leaves >= 2 grid steps (both v7x TensorCores busy) as long as the
    tile stays reasonably large (>= 64 rows)."""
    cap = min(cap, b_padded)
    best, best_multi = 16, None
    for cand in range(16, cap + 1, 16):
        if b_padded % cand == 0:
            best = cand
            if b_padded // cand >= 2 and cand >= 64:
                best_multi = cand
    return best_multi if best_multi is not None else best


def _pick_feature_tile(d_padded, cap):
    """Largest multiple-of-128 divisor of d_padded that is <= cap."""
    cap = min(cap, d_padded)
    best = 128
    for cand in range(128, cap + 1, 128):
        if d_padded % cand == 0:
            best = cand
    return best


def _vmem_estimate(tm, tn, din_p, dout_p, x_bytes, w_bytes, out_bytes):
    """Approximate VMEM footprint (Pallas double-buffers every pipelined block)."""
    db = 2
    total = 0
    total += db * 2 * tm * din_p * x_bytes        # x, y activation tiles
    total += db * 2 * din_p * tn * w_bytes        # wx, wy weight tiles
    total += db * 2 * tn * 4                      # bx, by (f32)
    total += db * tn * dout_p * w_bytes           # wo weight tile
    total += db * dout_p * 4                      # bo (f32)
    total += db * 2 * tm * tn * out_bytes         # out_x, out_y tiles
    total += db * tm * dout_p * out_bytes         # out tile
    total += tm * dout_p * 4                      # f32 accumulator scratch
    return total


def _gated_fusion_kernel(x_ref, y_ref,
                         wx_ref, bx_ref,
                         wy_ref, by_ref,
                         wo_ref, bo_ref,
                         out_x_ref, out_y_ref, out_ref,
                         acc_ref,
                         *, x_gate: bool):
    k = pl.program_id(1)

    @pl.when(k == 0)
    def _():
        acc_ref[...] = jnp.zeros_like(acc_ref)

    # In-kernel cast to the MXU dtype: free VPU filler under the MXU and
    # avoids a wrapper-side pad/astype pass over the activations in HBM.
    x = x_ref[...].astype(wx_ref.dtype)
    y = y_ref[...].astype(wy_ref.dtype)

    # fc_x / fc_y for this hidden-dim slab: bf16 MXU inputs, f32 accumulation.
    out_x = jnp.dot(x, wx_ref[...], preferred_element_type=jnp.float32) + bx_ref[...]
    out_y = jnp.dot(y, wy_ref[...], preferred_element_type=jnp.float32) + by_ref[...]

    # Gate in f32 (correct on v5e too).  sigmoid(z) = 1/(1+exp(-z)); exp goes
    # to the EUP and the approx reciprocal keeps the divide off the VALU.
    gate_src = out_x if x_gate else out_y
    partner = out_y if x_gate else out_x
    gate = pl.reciprocal(1.0 + jnp.exp(-gate_src), approx=True)
    fused = gate * partner

    # fc_out contribution of this hidden-dim slab, accumulated in f32.
    acc_ref[...] += jnp.dot(fused.astype(wo_ref.dtype), wo_ref[...],
                            preferred_element_type=jnp.float32)

    out_x_ref[...] = out_x.astype(out_x_ref.dtype)
    out_y_ref[...] = out_y.astype(out_y_ref.dtype)

    @pl.when(k == pl.num_programs(1) - 1)
    def _():
        out_ref[...] = (acc_ref[...] + bo_ref[...]).astype(out_ref.dtype)


def prepare_params(params, compute_dtype=jnp.bfloat16):
    """One-time weight prep (hoisted out of the per-call path): pad feature
    dims to multiples of 128 (lane-dense) and cast matmul weights to the MXU
    compute dtype.  Biases stay f32 (added after f32 accumulation)."""
    input_dim, dim = params["wx"].shape
    output_dim = params["wo"].shape[1]
    din_p = _round_up(input_dim, 128)
    d_p = _round_up(dim, 128)
    dout_p = _round_up(output_dim, 128)

    def pad2(a, rows, cols, dtype):
        if a.ndim == 1:
            a = a.reshape(1, -1)
        if a.shape != (rows, cols):
            a = jnp.pad(a, ((0, rows - a.shape[0]), (0, cols - a.shape[1])))
        return a.astype(dtype)

    return {
        "dims": (input_dim, dim, output_dim),
        "wx": pad2(params["wx"], din_p, d_p, compute_dtype),
        "wy": pad2(params["wy"], din_p, d_p, compute_dtype),
        "wo": pad2(params["wo"], d_p, dout_p, compute_dtype),
        "bx": pad2(params["bx"], 1, d_p, jnp.float32),
        "by": pad2(params["by"], 1, d_p, jnp.float32),
        "bo": pad2(params["bo"], 1, dout_p, jnp.float32),
    }


def gated_fusion(x, y, prepared, *, x_gate: bool = False,
                 out_dtype=jnp.bfloat16, tm_max: int = 512, tn_max: int = 512):
    """x, y: [B, input_dim] (any float dtype; cast to the MXU dtype in-kernel).
    prepared: output of prepare_params().
    Returns (out_x [B, dim], out_y [B, dim], out [B, output_dim]) in out_dtype."""
    input_dim, dim, output_dim = prepared["dims"]
    B, din = x.shape
    assert din == input_dim and y.shape == x.shape

    din_p, d_p = prepared["wx"].shape
    dout_p = prepared["wo"].shape[1]

    # Batch: pad only to the 16-row bf16 sublane pack (never a full tile).
    b_p = _round_up(B, 16)

    def pad_act(a):
        if a.shape == (b_p, din_p):
            return a
        return jnp.pad(a, ((0, b_p - a.shape[0]), (0, din_p - a.shape[1])))

    xp, yp = pad_act(x), pad_act(y)

    # Tile selection: exact divisors of the padded dims (no partial tiles),
    # shrunk if the double-buffered footprint would not leave VMEM headroom
    # (v7x: 64 MiB physical per TensorCore).
    x_bytes = xp.dtype.itemsize
    w_bytes = prepared["wx"].dtype.itemsize
    out_bytes = jnp.dtype(out_dtype).itemsize
    tm = _pick_batch_tile(b_p, tm_max)
    tn = _pick_feature_tile(d_p, tn_max)
    budget = 40 * 1024 * 1024
    for _ in range(12):
        est = _vmem_estimate(tm, tn, din_p, dout_p, x_bytes, w_bytes, out_bytes)
        if est <= budget:
            break
        if tm > 16:
            tm = _pick_batch_tile(b_p, max(16, tm // 2))
        elif tn > 128:
            tn = _pick_feature_tile(d_p, max(128, tn // 2))
        else:
            break
    est = _vmem_estimate(tm, tn, din_p, dout_p, x_bytes, w_bytes, out_bytes)
    vmem_limit = int(min(56 * 1024 * 1024,
                         max(32 * 1024 * 1024, est + 8 * 1024 * 1024)))

    kernel = functools.partial(_gated_fusion_kernel, x_gate=x_gate)
    grid = (b_p // tm, d_p // tn)   # (batch tiles: parallel, hidden tiles: reduction)

    out_x_p, out_y_p, out_p = pl.pallas_call(
        kernel,
        out_shape=(jax.ShapeDtypeStruct((b_p, d_p), out_dtype),
                   jax.ShapeDtypeStruct((b_p, d_p), out_dtype),
                   jax.ShapeDtypeStruct((b_p, dout_p), out_dtype)),
        grid=grid,
        in_specs=[
            pl.BlockSpec((tm, din_p), lambda i, k: (i, 0)),     # x
            pl.BlockSpec((tm, din_p), lambda i, k: (i, 0)),     # y
            pl.BlockSpec((din_p, tn), lambda i, k: (0, k)),     # wx
            pl.BlockSpec((1, tn), lambda i, k: (0, k)),         # bx
            pl.BlockSpec((din_p, tn), lambda i, k: (0, k)),     # wy
            pl.BlockSpec((1, tn), lambda i, k: (0, k)),         # by
            pl.BlockSpec((tn, dout_p), lambda i, k: (k, 0)),    # wo
            pl.BlockSpec((1, dout_p), lambda i, k: (0, 0)),     # bo
        ],
        out_specs=(
            pl.BlockSpec((tm, tn), lambda i, k: (i, k)),        # out_x slab
            pl.BlockSpec((tm, tn), lambda i, k: (i, k)),        # out_y slab
            pl.BlockSpec((tm, dout_p), lambda i, k: (i, 0)),    # out (resident over k)
        ),
        scratch_shapes=[pltpu.VMEM((tm, dout_p), jnp.float32)],
        compiler_params=pltpu.CompilerParams(
            dimension_semantics=("parallel", "arbitrary"),
            vmem_limit_bytes=vmem_limit),
    )(xp, yp, prepared["wx"], prepared["bx"], prepared["wy"], prepared["by"],
      prepared["wo"], prepared["bo"])

    return (out_x_p[:B, :dim], out_y_p[:B, :dim], out_p[:B, :output_dim])


def init_params(key, input_dim, dim, output_dim):
    """Deterministic synthetic parameters (not a checkpoint load)."""
    ks = jax.random.split(key, 6)
    scale_in = 1.0 / jnp.sqrt(input_dim)
    scale_d = 1.0 / jnp.sqrt(dim)
    return {
        "wx": jax.random.uniform(ks[0], (input_dim, dim), jnp.float32,
                                 -scale_in, scale_in),
        "bx": jax.random.uniform(ks[1], (1, dim), jnp.float32,
                                 -scale_in, scale_in),
        "wy": jax.random.uniform(ks[2], (input_dim, dim), jnp.float32,
                                 -scale_in, scale_in),
        "by": jax.random.uniform(ks[3], (1, dim), jnp.float32,
                                 -scale_in, scale_in),
        "wo": jax.random.uniform(ks[4], (dim, output_dim), jnp.float32,
                                 -scale_d, scale_d),
        "bo": jax.random.uniform(ks[5], (1, output_dim), jnp.float32,
                                 -scale_d, scale_d),
    }


def gated_fusion_ref(x, y, params, *, x_gate=False):
    """Pure-f32 JAX reference of the PyTorch forward."""
    out_x = x @ params["wx"] + params["bx"]
    out_y = y @ params["wy"] + params["by"]
    if x_gate:
        fused = jax.nn.sigmoid(out_x) * out_y
    else:
        fused = out_x * jax.nn.sigmoid(out_y)
    out = fused @ params["wo"] + params["bo"]
    return out_x, out_y, out


if __name__ == "__main__":
    # Small shapes consistent with the module's forward (Linear layers on [B, F]).
    B, input_dim, dim, output_dim = 8, 32, 32, 16

    key = jax.random.PRNGKey(0)
    kx, ky, kp = jax.random.split(key, 3)
    x = jax.random.normal(kx, (B, input_dim), jnp.float32)
    y = jax.random.normal(ky, (B, input_dim), jnp.float32)
    params = init_params(kp, input_dim, dim, output_dim)

    # One-time weight prep (hoisted out of the per-call path).
    prepared = prepare_params(params)

    out_x, out_y, out = gated_fusion(x, y, prepared, x_gate=False)
    jax.block_until_ready((out_x, out_y, out))

    # Correctness check vs the f32 reference (bf16 MXU path -> loosened tol).
    r_out_x, r_out_y, r_out = gated_fusion_ref(x, y, params, x_gate=False)
    assert jnp.allclose(out_x.astype(jnp.float32), r_out_x, atol=2e-2, rtol=2e-2)
    assert jnp.allclose(out_y.astype(jnp.float32), r_out_y, atol=2e-2, rtol=2e-2)
    assert jnp.allclose(out.astype(jnp.float32), r_out, atol=2e-2, rtol=2e-2)

    # Exercise the x_gate=True branch too.
    out_x2, out_y2, out2 = gated_fusion(x, y, prepared, x_gate=True)
    jax.block_until_ready((out_x2, out_y2, out2))
    _, _, r_out2 = gated_fusion_ref(x, y, params, x_gate=True)
    assert jnp.allclose(out2.astype(jnp.float32), r_out2, atol=2e-2, rtol=2e-2)

    print("KERNEL_OK")
</pallas_src>

<mosaic_0001>
module attributes {stable_mosaic.version = 11 : i64} {
  func.func @_gated_fusion_kernel(%arg0: i32, %arg1: i32, %arg2: memref<16x128xf32, #tpu.memory_space<vmem>>, %arg3: memref<16x128xf32, #tpu.memory_space<vmem>>, %arg4: memref<128x128xbf16, #tpu.memory_space<vmem>>, %arg5: memref<1x128xf32, #tpu.memory_space<vmem>>, %arg6: memref<128x128xbf16, #tpu.memory_space<vmem>>, %arg7: memref<1x128xf32, #tpu.memory_space<vmem>>, %arg8: memref<128x128xbf16, #tpu.memory_space<vmem>>, %arg9: memref<1x128xf32, #tpu.memory_space<vmem>>, %arg10: memref<16x128xbf16, #tpu.memory_space<vmem>>, %arg11: memref<16x128xbf16, #tpu.memory_space<vmem>>, %arg12: memref<16x128xbf16, #tpu.memory_space<vmem>>, %arg13: memref<16x128xf32, #tpu.memory_space<vmem>>) attributes {dimension_semantics = [#tpu.dimension_semantics<parallel>, #tpu.dimension_semantics<arbitrary>], iteration_bounds = array<i64: 1, 1>, scalar_prefetch = 0 : i64, scratch_operands = 1 : i64, tpu.core_type = #tpu.core_type<tc>, window_params = [{transform_indices = @transform_0, window_bounds = array<i64: 16, 128>}, {transform_indices = @transform_1, window_bounds = array<i64: 16, 128>}, {transform_indices = @transform_2, window_bounds = array<i64: 128, 128>}, {transform_indices = @transform_3, window_bounds = array<i64: 1, 128>}, {transform_indices = @transform_4, window_bounds = array<i64: 128, 128>}, {transform_indices = @transform_5, window_bounds = array<i64: 1, 128>}, {transform_indices = @transform_6, window_bounds = array<i64: 128, 128>}, {pipeline_mode = #tpu.pipeline_mode<synchronous>, transform_indices = @transform_7, window_bounds = array<i64: 1, 128>}, {transform_indices = @transform_8, window_bounds = array<i64: 16, 128>}, {transform_indices = @transform_9, window_bounds = array<i64: 16, 128>}, {transform_indices = @transform_10, window_bounds = array<i64: 16, 128>}]} {
    %c0_i32 = arith.constant 0 : i32
    %0 = arith.cmpi eq, %arg1, %c0_i32 : i32
    %1 = arith.extui %0 : i1 to i32
    %c0_i32_0 = arith.constant 0 : i32
    %2 = arith.cmpi ne, %1, %c0_i32_0 : i32
    scf.if %2 {
      %cst_28 = arith.constant 0.000000e+00 : f32
      %37 = vector.broadcast %cst_28 : f32 to vector<16x128xf32>
      %c0_29 = arith.constant 0 : index
      %c0_30 = arith.constant 0 : index
      %38 = vector.load %arg13[%c0_29, %c0_30] : memref<16x128xf32, #tpu.memory_space<vmem>>, vector<16x128xf32>
      tpu.vector_store %arg13[%c0_29, %c0_30], %37 {strides = array<i32>} : memref<16x128xf32, #tpu.memory_space<vmem>>, vector<16x128xf32>,
    } else {
    }
    %c0 = arith.constant 0 : index
    %c0_1 = arith.constant 0 : index
    %3 = vector.load %arg2[%c0, %c0_1] : memref<16x128xf32, #tpu.memory_space<vmem>>, vector<16x128xf32>
    %4 = arith.truncf %3 : vector<16x128xf32> to vector<16x128xbf16>
    %c0_2 = arith.constant 0 : index
    %c0_3 = arith.constant 0 : index
    %5 = vector.load %arg3[%c0_2, %c0_3] : memref<16x128xf32, #tpu.memory_space<vmem>>, vector<16x128xf32>
    %6 = arith.truncf %5 : vector<16x128xf32> to vector<16x128xbf16>
    %c0_4 = arith.constant 0 : index
    %c0_5 = arith.constant 0 : index
    %7 = vector.load %arg4[%c0_4, %c0_5] : memref<128x128xbf16, #tpu.memory_space<vmem>>, vector<128x128xbf16>
    %cst = arith.constant dense<0.000000e+00> : vector<16x128xf32>
    %8 = tpu.matmul %4, %7, %cst {dimension_numbers = #tpu.dot_dimension_numbers<[1], [0], [0], [1], [0, 0, 1, 1], [], []>} : vector<16x128xbf16>, vector<128x128xbf16>, vector<16x128xf32> -> vector<16x128xf32>
    %c0_6 = arith.constant 0 : index
    %c0_7 = arith.constant 0 : index
    %9 = vector.load %arg5[%c0_6, %c0_7] : memref<1x128xf32, #tpu.memory_space<vmem>>, vector<1x128xf32>
    %10 = vector.broadcast %9 : vector<1x128xf32> to vector<16x128xf32>
    %11 = arith.addf %8, %10 : vector<16x128xf32>
    %c0_8 = arith.constant 0 : index
    %c0_9 = arith.constant 0 : index
    %12 = vector.load %arg6[%c0_8, %c0_9] : memref<128x128xbf16, #tpu.memory_space<vmem>>, vector<128x128xbf16>
    %cst_10 = arith.constant dense<0.000000e+00> : vector<16x128xf32>
    %13 = tpu.matmul %6, %12, %cst_10 {dimension_numbers = #tpu.dot_dimension_numbers<[1], [0], [0], [1], [0, 0, 1, 1], [], []>} : vector<16x128xbf16>, vector<128x128xbf16>, vector<16x128xf32> -> vector<16x128xf32>
    %c0_11 = arith.constant 0 : index
    %c0_12 = arith.constant 0 : index
    %14 = vector.load %arg7[%c0_11, %c0_12] : memref<1x128xf32, #tpu.memory_space<vmem>>, vector<1x128xf32>
    %15 = vector.broadcast %14 : vector<1x128xf32> to vector<16x128xf32>
    %16 = arith.addf %13, %15 : vector<16x128xf32>
    %cst_13 = arith.constant 0.000000e+00 : f32
    %17 = vector.broadcast %cst_13 : f32 to vector<16x128xf32>
    %18 = arith.subf %17, %16 : vector<16x128xf32>
    %19 = math.exp %18 : vector<16x128xf32>
    %cst_14 = arith.constant 1.000000e+00 : f32
    %20 = vector.broadcast %cst_14 : f32 to vector<16x128xf32>
    %21 = arith.addf %20, %19 : vector<16x128xf32>
    %22 = tpu.reciprocal %21 {approx = true} : vector<16x128xf32> -> vector<16x128xf32>
    %23 = arith.mulf %22, %11 : vector<16x128xf32>
    %c0_15 = arith.constant 0 : index
    %c0_16 = arith.constant 0 : index
    %24 = vector.load %arg13[%c0_15, %c0_16] : memref<16x128xf32, #tpu.memory_space<vmem>>, vector<16x128xf32>
    %25 = arith.truncf %23 : vector<16x128xf32> to vector<16x128xbf16>
    %c0_17 = arith.constant 0 : index
    %c0_18 = arith.constant 0 : index
    %26 = vector.load %arg8[%c0_17, %c0_18] : memref<128x128xbf16, #tpu.memory_space<vmem>>, vector<128x128xbf16>
    %cst_19 = arith.constant dense<0.000000e+00> : vector<16x128xf32>
    %27 = tpu.matmul %25, %26, %cst_19 {dimension_numbers = #tpu.dot_dimension_numbers<[1], [0], [0], [1], [0, 0, 1, 1], [], []>} : vector<16x128xbf16>, vector<128x128xbf16>, vector<16x128xf32> -> vector<16x128xf32>
    %28 = arith.addf %24, %27 : vector<16x128xf32>
    %c0_20 = arith.constant 0 : index
    %c0_21 = arith.constant 0 : index
    %29 = vector.load %arg13[%c0_20, %c0_21] : memref<16x128xf32, #tpu.memory_space<vmem>>, vector<16x128xf32>
    tpu.vector_store %arg13[%c0_20, %c0_21], %28 {strides = array<i32>} : memref<16x128xf32, #tpu.memory_space<vmem>>, vector<16x128xf32>,
    %30 = arith.truncf %11 : vector<16x128xf32> to vector<16x128xbf16>
    %c0_22 = arith.constant 0 : index
    %c0_23 = arith.constant 0 : index
    %31 = vector.load %arg10[%c0_22, %c0_23] : memref<16x128xbf16, #tpu.memory_space<vmem>>, vector<16x128xbf16>
    tpu.vector_store %arg10[%c0_22, %c0_23], %30 {strides = array<i32>} : memref<16x128xbf16, #tpu.memory_space<vmem>>, vector<16x128xbf16>,
    %32 = arith.truncf %16 : vector<16x128xf32> to vector<16x128xbf16>
    %c0_24 = arith.constant 0 : index
    %c0_25 = arith.constant 0 : index
    %33 = vector.load %arg11[%c0_24, %c0_25] : memref<16x128xbf16, #tpu.memory_space<vmem>>, vector<16x128xbf16>
    tpu.vector_store %arg11[%c0_24, %c0_25], %32 {strides = array<i32>} : memref<16x128xbf16, #tpu.memory_space<vmem>>, vector<16x128xbf16>,
    %c0_i32_26 = arith.constant 0 : i32
    %34 = arith.cmpi eq, %arg1, %c0_i32_26 : i32
    %35 = arith.extui %34 : i1 to i32
    %c0_i32_27 = arith.constant 0 : i32
    %36 = arith.cmpi ne, %35, %c0_i32_27 : i32
    scf.if %36 {
      %c0_28 = arith.constant 0 : index
      %c0_29 = arith.constant 0 : index
      %37 = vector.load %arg13[%c0_28, %c0_29] : memref<16x128xf32, #tpu.memory_space<vmem>>, vector<16x128xf32>
      %c0_30 = arith.constant 0 : index
      %c0_31 = arith.constant 0 : index
      %38 = vector.load %arg9[%c0_30, %c0_31] : memref<1x128xf32, #tpu.memory_space<vmem>>, vector<1x128xf32>
      %39 = vector.broadcast %38 : vector<1x128xf32> to vector<16x128xf32>
      %40 = arith.addf %37, %39 : vector<16x128xf32>
      %41 = arith.truncf %40 : vector<16x128xf32> to vector<16x128xbf16>
      %c0_32 = arith.constant 0 : index
      %c0_33 = arith.constant 0 : index
      %42 = vector.load %arg12[%c0_32, %c0_33] : memref<16x128xbf16, #tpu.memory_space<vmem>>, vector<16x128xbf16>
      tpu.vector_store %arg12[%c0_32, %c0_33], %41 {strides = array<i32>} : memref<16x128xbf16, #tpu.memory_space<vmem>>, vector<16x128xbf16>,
    } else {
    }
    return
  }
  func.func @transform_0(%arg0: i32, %arg1: i32) -> (i32, i32) {
    %c0_i32 = arith.constant 0 : i32
    %c0_i32_0 = arith.constant 0 : i32
    return %arg0, %c0_i32 : i32, i32
  }
  func.func @transform_1(%arg0: i32, %arg1: i32) -> (i32, i32) {
    %c0_i32 = arith.constant 0 : i32
    %c0_i32_0 = arith.constant 0 : i32
    return %arg0, %c0_i32 : i32, i32
  }
  func.func @transform_2(%arg0: i32, %arg1: i32) -> (i32, i32) {
    %c0_i32 = arith.constant 0 : i32
    %c0_i32_0 = arith.constant 0 : i32
    return %c0_i32, %arg1 : i32, i32
  }
  func.func @transform_3(%arg0: i32, %arg1: i32) -> (i32, i32) {
    %c0_i32 = arith.constant 0 : i32
    %c0_i32_0 = arith.constant 0 : i32
    return %c0_i32, %arg1 : i32, i32
  }
  func.func @transform_4(%arg0: i32, %arg1: i32) -> (i32, i32) {
    %c0_i32 = arith.constant 0 : i32
    %c0_i32_0 = arith.constant 0 : i32
    return %c0_i32, %arg1 : i32, i32
  }
  func.func @transform_5(%arg0: i32, %arg1: i32) -> (i32, i32) {
    %c0_i32 = arith.constant 0 : i32
    %c0_i32_0 = arith.constant 0 : i32
    return %c0_i32, %arg1 : i32, i32
  }
  func.func @transform_6(%arg0: i32, %arg1: i32) -> (i32, i32) {
    %c0_i32 = arith.constant 0 : i32
    %c0_i32_0 = arith.constant 0 : i32
    return %arg1, %c0_i32 : i32, i32
  }
  func.func @transform_7(%arg0: i32, %arg1: i32) -> (i32, i32) {
    %c0_i32 = arith.constant 0 : i32
    %c0_i32_0 = arith.constant 0 : i32
    %c0_i32_1 = arith.constant 0 : i32
    return %c0_i32, %c0_i32_0 : i32, i32
  }
  func.func @transform_8(%arg0: i32, %arg1: i32) -> (i32, i32) {
    %c0_i32 = arith.constant 0 : i32
    return %arg0, %arg1 : i32, i32
  }
  func.func @transform_9(%arg0: i32, %arg1: i32) -> (i32, i32) {
    %c0_i32 = arith.constant 0 : i32
    return %arg0, %arg1 : i32, i32
  }
  func.func @transform_10(%arg0: i32, %arg1: i32) -> (i32, i32) {
    %c0_i32 = arith.constant 0 : i32
    %c0_i32_0 = arith.constant 0 : i32
    return %arg0, %c0_i32 : i32, i32
  }
}

</mosaic_0001>

<bundles_post_ra>
// kernel: tpu_custom_call.1
= control target key start
LH: loop header
LB: loop body
LE: loop exit
PB: predicated region body
PF: predicated region fallthrough
CT: control target
= control target key end

     0   :  { %16 = vsyncpa [#allocation4], 0  ;;  %s1158_s0 = inlined_call_operand.hbm [shape: f32[16,128], index: 0, kind: input, shape index: {}]   ;;  %s1159_s1 = inlined_call_operand.hbm [shape: f32[16,128], index: 1, kind: input, shape index: {}]   ;;  %s1160_s2 = inlined_call_operand.hbm [shape: bf16[128,128], index: 2, kind: input, shape index: {}]   ;;  %s1161_s3 = inlined_call_operand.vmem [shape: f32[1,128], index: 3, kind: input, shape index: {}]   ;;  %s1162_s4 = inlined_call_operand.hbm [shape: bf16[128,128], index: 4, kind: input, shape index: {}]   ;;  %s1163_s5 = inlined_call_operand.vmem [shape: f32[1,128], index: 5, kind: input, shape index: {}]   ;;  %s1164_s6 = inlined_call_operand.hbm [shape: bf16[128,128], index: 6, kind: input, shape index: {}]   ;;  %s1165_s7 = inlined_call_operand.vmem [shape: f32[1,128], index: 7, kind: input, shape index: {}]   ;;  %s1166_s8 = inlined_call_operand.hbm [shape: bf16[16,128], index: 8, kind: output, shape index: {0}]   ;;  %s1167_s9 = inlined_call_operand.hbm [shape: bf16[16,128], index: 9, kind: output, shape index: {1}]   ;;  %s1168_s10 = inlined_call_operand.hbm [shape: bf16[16,128], index: 10, kind: output, shape index: {2}]  }
   0x1   :  { %17 = vsyncpa [#allocation7], 0 }
   0x2   :  { %18 = vsyncpa [#allocation10], 0 }
   0x3   :  { %19 = vsyncpa [#allocation5], 0 }
   0x4   :  { %20 = vsyncpa [#allocation14], 0  ;;  %s930_s13 = smov [#allocation6]   ;;  %s744_s17 = scalar_lea.hbm %s1159_s1, 256 }
   0x5   :  { %s38_s14 = sshll.u32 %s930_s13, 4  ;;  %p745_p0 = scmp.ne.s32.totalorder %s1159_s1, %s744_s17  ;;  %s39_s14 = int_to_ptr.vmem [resolvable:$true] %s38_s14 }
   0x6   :  { %p748_p1 = scmp.lt.u32.totalorder %s744_s17, %s1159_s1 }
   0x8   :  { %p750_p2 = pnand %p748_p1, %p745_p0 }
   0xa   :  { %753 = shalt.err (!%p750_p2)
}
   0xb   :  { %s754_s22 = scalar_lea.vmem %s39_s14, 256  ;;  %p759_p4 = scmp.lt.s32.totalorder %s39_s14, %s39_s14 }
   0xc   :  { %p755_p3 = scmp.ne.s32.totalorder %s39_s14, %s754_s22  ;;  %p760_p5 = scmp.lt.s32.totalorder %s754_s22, %s754_s22 }
   0xe   :  { %p761_p6 = por %p760_p5, %p759_p4 }
  0x10   :  { %p762_p7 = pnand %p761_p6, %p755_p3 }
  0x12   :  { %765 = shalt.err (!%p762_p7)
}
  0x13   :  { %s931_s23 = smov 128   ;;  %s932_s24 = smov 8  }
  0x14   :  { %44 = dma.hbm_to_vmem [thread:$0]  %s1159_s1, 256, %s39_s14, [#allocation7], %s931_s23, %s931_s23, %s932_s24  }
  0x15   :  { %s933_s27 = smov [#allocation9]   ;;  %s934_s29 = smov [#allocation3]  }
  0x16   :  { %s64_s28 = sshll.u32 %s933_s27, 4  ;;  %s26_s30 = sshll.u32 %s934_s29, 4  ;;  %s65_s28 = int_to_ptr.vmem [resolvable:$true] %s64_s28  ;;  %s27_s30 = int_to_ptr.vmem [resolvable:$true] %s26_s30 }
  0x17   :  { %s766_s13 = scalar_lea.hbm %s1162_s4, 1024 }
  0x18   :  { %p767_p8 = scmp.ne.s32.totalorder %s1162_s4, %s766_s13  ;;  %p770_p9 = scmp.lt.u32.totalorder %s766_s13, %s1162_s4 }
  0x1a   :  { %p772_p10 = pnand %p770_p9, %p767_p8 }
  0x1c   :  { %775 = shalt.err (!%p772_p10)
}
  0x1d   :  { %s776_s1 = scalar_lea.vmem %s65_s28, 1024  ;;  %p781_p12 = scmp.lt.s32.totalorder %s65_s28, %s65_s28 }
  0x1e   :  { %p777_p11 = scmp.ne.s32.totalorder %s65_s28, %s776_s1  ;;  %p782_p13 = scmp.lt.s32.totalorder %s776_s1, %s776_s1 }
  0x20   :  { %p783_p0 = por %p782_p13, %p781_p12 }
  0x22   :  { %p784_p1 = pnand %p783_p0, %p777_p11 }
  0x24   :  { %787 = shalt.err (!%p784_p1)
}
  0x25   :  { %s935_s14 = smov 64   ;;  %s936_s19 = smov 4  }
  0x26   :  { %70 = dma.hbm_to_vmem [thread:$0]  %s1162_s4, 1024, %s65_s28, [#allocation10], %s935_s14, %s935_s14, %s936_s19  }
  0x27   :  { %s788_s26 = scalar_lea.hbm %s1158_s0, 256 }
  0x28   :  { %p789_p2 = scmp.ne.s32.totalorder %s1158_s0, %s788_s26  ;;  %p792_p3 = scmp.lt.u32.totalorder %s788_s26, %s1158_s0 }
  0x2a   :  { %p794_p4 = pnand %p792_p3, %p789_p2 }
  0x2c   :  { %797 = shalt.err (!%p794_p4)
}
  0x2d   :  { %s798_s13 = scalar_lea.vmem %s27_s30, 256  ;;  %p803_p6 = scmp.lt.s32.totalorder %s27_s30, %s27_s30 }
  0x2e   :  { %p799_p5 = scmp.ne.s32.totalorder %s27_s30, %s798_s13  ;;  %p804_p7 = scmp.lt.s32.totalorder %s798_s13, %s798_s13 }
  0x30   :  { %p805_p8 = por %p804_p7, %p803_p6 }
  0x32   :  { %p806_p9 = pnand %p805_p8, %p799_p5 }
  0x34   :  { %809 = shalt.err (!%p806_p9)
}
  0x35   :  { %32 = dma.hbm_to_vmem [thread:$0]  %s1158_s0, 256, %s27_s30, [#allocation4], %s931_s23, %s931_s23, %s932_s24  }
  0x36   :  { %s937_s15 = smov [#allocation8]   ;;  %s938_s17 = smov [#allocation11]  }
  0x37   :  { %s50_s16 = sshll.u32 %s937_s15, 4  ;;  %s78_s18 = sshll.u32 %s938_s17, 4  ;;  %s51_s16 = int_to_ptr.vmem [resolvable:$true] %s50_s16  ;;  %s79_s18 = int_to_ptr.vmem [resolvable:$true] %s78_s18 }
  0x38   :  { %s810_s21 = scalar_lea.hbm %s1160_s2, 1024 }
  0x39   :  { %p811_p10 = scmp.ne.s32.totalorder %s1160_s2, %s810_s21  ;;  %p814_p11 = scmp.lt.u32.totalorder %s810_s21, %s1160_s2 }
  0x3b   :  { %p816_p12 = pnand %p814_p11, %p811_p10 }
  0x3d   :  { %819 = shalt.err (!%p816_p12)
}
  0x3e   :  { %s820_s0 = scalar_lea.vmem %s51_s16, 1024  ;;  %p825_p0 = scmp.lt.s32.totalorder %s51_s16, %s51_s16 }
  0x3f   :  { %p821_p13 = scmp.ne.s32.totalorder %s51_s16, %s820_s0  ;;  %p826_p1 = scmp.lt.s32.totalorder %s820_s0, %s820_s0 }
  0x41   :  { %p827_p2 = por %p826_p1, %p825_p0 }
  0x43   :  { %p828_p3 = pnand %p827_p2, %p821_p13 }
  0x45   :  { %831 = shalt.err (!%p828_p3)
}
  0x46   :  { %56 = dma.hbm_to_vmem [thread:$0]  %s1160_s2, 1024, %s51_s16, [#allocation7], %s935_s14, %s935_s14, %s936_s19  }
  0x47   :  { %s832_s11 = scalar_lea.hbm %s1164_s6, 1024 }
  0x48   :  { %p833_p4 = scmp.ne.s32.totalorder %s1164_s6, %s832_s11  ;;  %p836_p5 = scmp.lt.u32.totalorder %s832_s11, %s1164_s6 }
  0x4a   :  { %p838_p6 = pnand %p836_p5, %p833_p4 }
  0x4c   :  { %841 = shalt.err (!%p838_p6)
}
  0x4d   :  { %s842_s15 = scalar_lea.vmem %s79_s18, 1024  ;;  %p847_p8 = scmp.lt.s32.totalorder %s79_s18, %s79_s18 }
  0x4e   :  { %p843_p7 = scmp.ne.s32.totalorder %s79_s18, %s842_s15  ;;  %p848_p9 = scmp.lt.s32.totalorder %s842_s15, %s842_s15 }
  0x50   :  { %p849_p10 = por %p848_p9, %p847_p8 }
  0x52   :  { %p850_p11 = pnand %p849_p10, %p843_p7 }
  0x54   :  { %853 = shalt.err (!%p850_p11)
}
  0x55   :  { %84 = dma.hbm_to_vmem [thread:$0]  %s1164_s6, 1024, %s79_s18, [#allocation10], %s935_s14, %s935_s14, %s936_s19  }
  0x56   :  { %920 = dma.done.wait [#allocation4], 256  }
  0x57   :  { %921 = vsyncadd [#allocation4], 4294967040 }
  0x58   :  { %922 = dma.done.wait [#allocation7], 1280  }
  0x59   :  { %923 = vsyncadd [#allocation7], 4294966016 }
  0x5a   :  { %924 = dma.done.wait [#allocation10], 2048  }
  0x5b   :  { %925 = vsyncadd [#allocation10], 4294965248  ;;  %v939_v0 = vmov 0.0   ;;  %vm940_vm0 = vmmov 0   ;;  %v712_v1 = vld [vmem:[#allocation9] sm:$0xff]   ;;  %v713_v2 = vld [vmem:[#allocation9 + $0x8] sm:$0xff]  }
  0x5c   :  { %658 = vmatprep.subr.bf16.mxu1 %v939_v0  ;;  %638 = vmatprep.subr.bf16.mxu0 %v939_v0  ;;  %v714_v3 = vld [vmem:[#allocation9 + $0x10] sm:$0xff]   ;;  %v719_v4 = vld [vmem:[#allocation8] sm:$0xff]   ;;  %v721_v5 = vld [vmem:[#allocation8 + $0x8] sm:$0xff]   ;;  %s942_s20 = smov [#allocation12]  }
  0x5d   :  { %674 = vmatprep.mubr.msk.bf16.mxu1 %vm940_vm0, %v939_v0  ;;  %654 = vmatprep.mubr.msk.bf16.mxu0 %vm940_vm0, %v939_v0  ;;  %v715_v6 = vld [vmem:[#allocation9 + $0x18] sm:$0xff]   ;;  %v722_v7 = vld [vmem:[#allocation8 + $0x10] sm:$0xff]   ;;  %v716_v8 = vld [vmem:[#allocation9 + $0x20] sm:$0xff]   ;;  %s512_s21 = sshll.u32 %s942_s20, 4  ;;  %s513_s21 = int_to_ptr.vmem [resolvable:$true] %s512_s21 }
  0x5e   :  { %659 = vmatpush3.bf16.msra.mxu1 %v712_v1  ;;  %639 = vmatpush3.bf16.msra.mxu0 %v719_v4  ;;  %v717_v9 = vld [vmem:[#allocation9 + $0x28] sm:$0xff]   ;;  %v723_v10 = vld [vmem:[#allocation8 + $0x18] sm:$0xff]   ;;  %v724_v11 = vld [vmem:[#allocation8 + $0x20] sm:$0xff]  }
  0x5f   :  { %660 = vmatprep.subr.bf16.mxu1 %v939_v0  ;;  %640 = vmatprep.subr.bf16.mxu0 %v939_v0  ;;  %v718_v12 = vld [vmem:[#allocation9 + $0x30] sm:$0xff]   ;;  %v725_v13 = vld [vmem:[#allocation8 + $0x28] sm:$0xff]   ;;  %v720_v14 = vld [vmem:[#allocation9 + $0x38] sm:$0xff]  }
  0x60   :  { %v112_v15 = vld [vmem:[#allocation6] sm:$0xff]  ;;  %v113_v16 = vld [vmem:[#allocation6 + $0x8] sm:$0xff]  ;;  %v109_v20 = vld [vmem:[#allocation3] sm:$0xff] }
  0x61   :  { %v114_v17 = vpack.c.bf16 %v113_v16, %v112_v15  ;;  %v726_v18 = vld [vmem:[#allocation8 + $0x30] sm:$0xff]   ;;  %v727_v19 = vld [vmem:[#allocation8 + $0x38] sm:$0xff]   ;;  %v110_v21 = vld [vmem:[#allocation3 + $0x8] sm:$0xff] }
  0x62   :  { %661 = vmatpush3.bf16.msra.mxu1 %v713_v2  ;;  %641 = vmatpush3.bf16.msra.mxu0 %v721_v5  ;;  %v111_v22 = vpack.c.bf16 %v110_v21, %v109_v20  ;;  %v728_v23 = vld [vmem:[#allocation11] sm:$0xff]   ;;  %v729_v24 = vld [vmem:[#allocation11 + $0x8] sm:$0xff]   ;;  %v730_v25 = vld [vmem:[#allocation11 + $0x10] sm:$0xff]  }
  0x63   :  { %662 = vmatprep.subr.bf16.mxu1 %v939_v0  ;;  %642 = vmatprep.subr.bf16.mxu0 %v939_v0  ;;  %v731_v26 = vld [vmem:[#allocation11 + $0x18] sm:$0xff]   ;;  %v732_v27 = vld [vmem:[#allocation11 + $0x20] sm:$0xff]   ;;  %v733_v28 = vld [vmem:[#allocation11 + $0x28] sm:$0xff]  }
  0x64   :  { %v734_v29 = vld [vmem:[#allocation11 + $0x30] sm:$0xff]   ;;  %v735_v30 = vld [vmem:[#allocation11 + $0x38] sm:$0xff]   ;;  %v566_v31 = vld [vmem:[%s1163_s5] ss:$0 sm:$0xff] }
  0x65   :  { %v557_v42 = vld [vmem:[%s1161_s3] ss:$0 sm:$0xff]  ;;  %s941_s3 = smov [#allocation13]  }
  0x66   :  { %663 = vmatpush3.bf16.msra.mxu1 %v714_v3  ;;  %643 = vmatpush3.bf16.msra.mxu0 %v722_v7  ;;  %s524_s5 = sshll.u32 %s941_s3, 4  ;;  %s525_s5 = int_to_ptr.vmem [resolvable:$true] %s524_s5 }
  0x67   :  { %664 = vmatprep.subr.bf16.mxu1 %v939_v0  ;;  %644 = vmatprep.subr.bf16.mxu0 %v939_v0  ;;  %s854_s22 = scalar_lea.vmem %s525_s5, 128  ;;  %p859_p13 = scmp.lt.s32.totalorder %s525_s5, %s525_s5 }
  0x68   :  { %p855_p12 = scmp.ne.s32.totalorder %s525_s5, %s854_s22  ;;  %p860_p0 = scmp.lt.s32.totalorder %s854_s22, %s854_s22 }
  0x6a   :  { %665 = vmatpush3.bf16.msra.mxu1 %v715_v6  ;;  %645 = vmatpush3.bf16.msra.mxu0 %v723_v10  ;;  %p861_p1 = por %p860_p0, %p859_p13 }
  0x6b   :  { %666 = vmatprep.subr.bf16.mxu1 %v939_v0  ;;  %646 = vmatprep.subr.bf16.mxu0 %v939_v0 }
  0x6c   :  { %p862_p2 = pnand %p861_p1, %p855_p12 }
  0x6e   :  { %667 = vmatpush3.bf16.msra.mxu1 %v716_v8  ;;  %647 = vmatpush3.bf16.msra.mxu0 %v724_v11 }
  0x6f   :  { %668 = vmatprep.subr.bf16.mxu1 %v939_v0  ;;  %648 = vmatprep.subr.bf16.mxu0 %v939_v0 }
  0x72   :  { %669 = vmatpush3.bf16.msra.mxu1 %v717_v9  ;;  %649 = vmatpush3.bf16.msra.mxu0 %v725_v13 }
  0x73   :  { %670 = vmatprep.subr.bf16.mxu1 %v939_v0  ;;  %650 = vmatprep.subr.bf16.mxu0 %v939_v0 }
  0x76   :  { %671 = vmatpush3.bf16.msra.mxu1 %v718_v12  ;;  %651 = vmatpush3.bf16.msra.mxu0 %v726_v18 }
  0x77   :  { %672 = vmatprep.subr.bf16.mxu1 %v939_v0  ;;  %652 = vmatprep.subr.bf16.mxu0 %v939_v0 }
  0x7a   :  { %673 = vmatpush3.bf16.msra.mxu1 %v720_v14  ;;  %653 = vmatpush3.bf16.msra.mxu0 %v727_v19 }
  0x7b   :  { %678 = vmatprep.subr.bf16.mxu0 %v939_v0 }
  0x7d   :  { %675 = vmatmul.mubr.bf16.vlgmr.msra.gmra.mrb[0].mxu1 %v114_v17  ;;  %655 = vmatmul.mubr.bf16.vlgmr.msra.gmra.mrb[0].mxu0 %v111_v22 }
  0x7e   :  { %694 = vmatprep.mubr.msk.bf16.mxu0 %vm940_vm0, %v939_v0  ;;  %679 = vmatpush3.bf16.msra.mxu0 %v728_v23 }
  0x7f   :  { %680 = vmatprep.subr.bf16.mxu0 %v939_v0 }
  0x82   :  { %681 = vmatpush3.bf16.msra.mxu0 %v729_v24 }
  0x83   :  { %682 = vmatprep.subr.bf16.mxu0 %v939_v0 }
  0x86   :  { %683 = vmatpush3.bf16.msra.mxu0 %v730_v25 }
  0x87   :  { %684 = vmatprep.subr.bf16.mxu0 %v939_v0 }
  0x8a   :  { %685 = vmatpush3.bf16.msra.mxu0 %v731_v26 }
  0x8b   :  { %686 = vmatprep.subr.bf16.mxu0 %v939_v0 }
  0x8e   :  { %687 = vmatpush3.bf16.msra.mxu0 %v732_v27 }
  0x8f   :  { %688 = vmatprep.subr.bf16.mxu0 %v939_v0 }
  0x92   :  { %689 = vmatpush3.bf16.msra.mxu0 %v733_v28 }
  0x93   :  { %690 = vmatprep.subr.bf16.mxu0 %v939_v0 }
  0x96   :  { %691 = vmatpush3.bf16.msra.mxu0 %v734_v29 }
  0x97   :  { %692 = vmatprep.subr.bf16.mxu0 %v939_v0 }
  0x9a   :  { %693 = vmatpush3.bf16.msra.mxu0 %v735_v30 }
 0x150   :  { %v332_v32 = vpop.f32.mrb[0].mxu1  ;;  %v220_v44 = vpop.f32.mrb[0].mxu0 }
 0x151   :  { %v333_v33 = vadd.f32 %v566_v31, %v332_v32  ;;  %v676_v34 = vpop.f32.mrb[1].mxu1  ;;  %v221_v45 = vadd.f32 %v557_v42, %v220_v44  ;;  %v656_v46 = vpop.f32.mrb[1].mxu0 }
 0x152   :  { %v335_v35 = vpop.f32.mrb[2].mxu1  ;;  %v223_v47 = vpop.f32.mrb[2].mxu0 }
 0x153   :  { %v339_v36 = vsub.f32 0.0, %v333_v33  ;;  %v336_v37 = vadd.f32 %v566_v31, %v335_v35  ;;  %v677_v38 = vpop.f32.mrb[3].mxu1  ;;  %v224_v48 = vadd.f32 %v557_v42, %v223_v47  ;;  %v657_v49 = vpop.f32.mrb[3].mxu0 }
 0x155   :  { %v341_v39 = vmul.f32 1.442695, %v339_v36  ;;  %v340_v40 = vsub.f32 0.0, %v336_v37  ;;  %v604_v41 = vpack.c.bf16 %v336_v37, %v333_v33  ;;  %v599_v50 = vpack.c.bf16 %v224_v48, %v221_v45 }
 0x157   :  { %736 = vpow2.f32 %v341_v39  ;;  %v343_v43 = vmul.f32 1.442695, %v340_v40  ;;  %605 = vst [vmem:[#allocation13] sm:$0xff] %v604_v41   ;;  %600 = vst [vmem:[#allocation12] sm:$0xff] %v599_v50  }
 0x159   :  { %738 = vpow2.f32 %v343_v43 }
 0x161   :  { %v737_v51 = vpop.eup %736 }
 0x162   :  { %v345_v52 = vadd.f32 1.0, %v737_v51 }
 0x163   :  { %v739_v53 = vpop.eup %738 }
 0x164   :  { %740 = vrcp.f32 %v345_v52  ;;  %v346_v54 = vadd.f32 1.0, %v739_v53 }
 0x166   :  { %742 = vrcp.f32 %v346_v54 }
 0x16e   :  { %v741_v55 = vpop.eup %740 }
 0x16f   :  { %v349_v56 = vmul.f32 %v741_v55, %v221_v45 }
 0x170   :  { %v743_v57 = vpop.eup %742 }
 0x171   :  { %v350_v58 = vmul.f32 %v743_v57, %v224_v48 }
 0x173   :  { %v353_v59 = vpack.c.bf16 %v350_v58, %v349_v56 }
 0x175   :  { %695 = vmatmul.mubr.bf16.vlgmr.msra.gmra.mrb[4].mxu0 %v353_v59 }
 0x176   :  { %865 = shalt.err (!%p862_p2)
}
 0x177   :  { %s866_s27 = scalar_lea.hbm %s1167_s9, 128 }
 0x178   :  { %p867_p3 = scmp.ne.s32.totalorder %s1167_s9, %s866_s27  ;;  %p870_p4 = scmp.lt.u32.totalorder %s866_s27, %s1167_s9 }
 0x17a   :  { %p872_p5 = pnand %p870_p4, %p867_p3 }
 0x17c   :  { %875 = shalt.err (!%p872_p5)
}
 0x17d   :  { %530 = dma.vmem_to_hbm [thread:$0]  %s525_s5, 128, %s1167_s9, [#allocation14], %s935_s14, %s935_s14, %s936_s19  }
 0x17e   :  { %s876_s12 = scalar_lea.vmem %s513_s21, 128  ;;  %p881_p7 = scmp.lt.s32.totalorder %s513_s21, %s513_s21 }
 0x17f   :  { %p877_p6 = scmp.ne.s32.totalorder %s513_s21, %s876_s12  ;;  %p882_p8 = scmp.lt.s32.totalorder %s876_s12, %s876_s12 }
 0x181   :  { %p883_p9 = por %p882_p8, %p881_p7 }
 0x183   :  { %p884_p10 = pnand %p883_p9, %p877_p6 }
 0x185   :  { %887 = shalt.err (!%p884_p10)
}
 0x186   :  { %s888_s28 = scalar_lea.hbm %s1166_s8, 128 }
 0x187   :  { %p889_p11 = scmp.ne.s32.totalorder %s1166_s8, %s888_s28  ;;  %p892_p12 = scmp.lt.u32.totalorder %s888_s28, %s1166_s8 }
 0x189   :  { %p894_p13 = pnand %p892_p12, %p889_p11 }
 0x18b   :  { %897 = shalt.err (!%p894_p13)
}
 0x18c   :  { %518 = dma.vmem_to_hbm [thread:$0]  %s513_s21, 128, %s1166_s8, [#allocation5], %s935_s14, %s935_s14, %s936_s19  }
 0x18d   :  { %v587_v61 = vld [vmem:[%s1165_s7] ss:$0 sm:$0xff]  ;;  %s943_s3 = smov [#allocation15]  }
 0x18e   :  { %s536_s5 = sshll.u32 %s943_s3, 4  ;;  %s537_s5 = int_to_ptr.vmem [resolvable:$true] %s536_s5 }
 0x18f   :  { %s898_s20 = scalar_lea.vmem %s537_s5, 128  ;;  %p903_p1 = scmp.lt.s32.totalorder %s537_s5, %s537_s5 }
 0x190   :  { %p899_p0 = scmp.ne.s32.totalorder %s537_s5, %s898_s20  ;;  %p904_p2 = scmp.lt.s32.totalorder %s898_s20, %s898_s20 }
 0x192   :  { %p905_p3 = por %p904_p2, %p903_p1 }
 0x194   :  { %p906_p4 = pnand %p905_p3, %p899_p0 }
 0x248   :  { %v452_v60 = vpop.f32.mrb[4].mxu0 }
 0x249   :  { %v696_v62 = vpop.f32.mrb[5].mxu0  ;;  %v495_v0 = vadd.f32 %v587_v61, %v452_v60 }
 0x24a   :  { %v455_v63 = vpop.f32.mrb[6].mxu0 }
 0x24b   :  { %v496_v1 = vadd.f32 %v587_v61, %v455_v63  ;;  %v697_v2 = vpop.f32.mrb[7].mxu0 }
 0x24d   :  { %v609_v3 = vpack.c.bf16 %v496_v1, %v495_v0 }
 0x24f   :  { %610 = vst [vmem:[#allocation15] sm:$0xff] %v609_v3  }
 0x250   :  { %909 = shalt.err (!%p906_p4)
}
 0x251   :  { %s910_s7 = scalar_lea.hbm %s1168_s10, 128 }
 0x252   :  { %p911_p5 = scmp.ne.s32.totalorder %s1168_s10, %s910_s7  ;;  %p914_p6 = scmp.lt.u32.totalorder %s910_s7, %s1168_s10 }
 0x254   :  { %p916_p7 = pnand %p914_p6, %p911_p5 }
 0x256   :  { %919 = shalt.err (!%p916_p7)
}
 0x257   :  { %542 = dma.vmem_to_hbm [thread:$0]  %s537_s5, 128, %s1168_s10, [#allocation14], %s935_s14, %s935_s14, %s936_s19  }
 0x258   :  { %926 = dma.done.wait [#allocation5], 128  }
 0x259   :  { %927 = vsyncadd [#allocation5], 4294967168 }
 0x25a   :  { %928 = dma.done.wait [#allocation14], 256  }
 0x25b   :  { %929 = vsyncadd [#allocation14], 4294967040 }
 0x25c   :  { %552 = vsyncpa [#allocation4], 1 }
 0x25d   :  { %553 = vsyncpa [#allocation7], 1 }
 0x25e   :  { %554 = vsyncpa [#allocation10], 1 }
 0x25f   :  { %555 = vsyncpa [#allocation5], 1 }
 0x260   :  { %556 = vsyncpa [#allocation14], 1 }

</bundles_post_ra>
